<compile_context>
chip_gen: v5e
topology: v5e:2x2
jax: 0.10.0
libtpu: 0.0.40
codegen_flags: <defaults>
</compile_context>

<pallas_src>
import jax
import jax.numpy as jnp
from jax.experimental import pallas as pl
from jax.experimental.pallas import tpu as pltpu


def _text_decoder_kernel(x_ref, w1_ref, b1_ref, w2_ref, b2_ref, o_ref):
    # In-kernel cast of x to the MXU compute dtype (x is read from HBM once,
    # in its original dtype; the cast is a cheap VPU op).
    x = x_ref[...].astype(w1_ref.dtype)
    # fc1 on the MXU, f32 accumulation.
    h = jnp.dot(x, w1_ref[...], preferred_element_type=jnp.float32)
    # Bias add + ReLU epilogue in f32 on the VPU.
    h = jnp.maximum(h + b1_ref[...], 0.0)
    # dropout(p=0.1) in eval mode == identity.
    # fc2: hidden cast back to the matmul compute dtype, f32 accumulation.
    y = jnp.dot(h.astype(w2_ref.dtype), w2_ref[...],
                preferred_element_type=jnp.float32)
    o_ref[...] = (y + b2_ref[...]).astype(o_ref.dtype)


def prepare_params(w1, b1, w2, b2, *, compute_dtype=jnp.bfloat16):
    """One-off parameter preparation (do this OUTSIDE the per-call path):
    weights -> compute_dtype (MXU operands), biases -> f32 row vectors
    (added to the f32 accumulator). Avoids a per-forward f32->bf16 cast pass
    over the weights."""
    return (w1.astype(compute_dtype),
            b1.astype(jnp.float32).reshape(1, -1),
            w2.astype(compute_dtype),
            b2.astype(jnp.float32).reshape(1, -1))


def _default_batch_tile(B):
    if B <= 1024:
        return B                      # single grid step; block == full array dims
    # Multi-step: tile is a multiple of 256 (v6e/v7x MXU pass; also 128-aligned
    # for v5e), capped at 2048, with an EVEN number of >= 2 grid steps so both
    # v7x TensorCores get balanced work under dimension_semantics="parallel".
    steps = max(2, pl.cdiv(B, 2048))
    steps += steps % 2
    return pl.cdiv(pl.cdiv(B, steps), 256) * 256


def text_decoder_forward(x, w1, b1, w2, b2, *, compute_dtype=jnp.bfloat16,
                         out_dtype=None, batch_tile=None):
    """x: (B, latent_dim); w1: (latent_dim, 512); b1: (512,) or (1, 512);
    w2: (512, output_dim); b2: (output_dim,) or (1, output_dim).

    Pass parameters through `prepare_params` once for steady-state inference;
    raw f32 params are accepted but are cast here (an extra HBM pass per call).

    out_dtype defaults to x.dtype; pass jnp.bfloat16 to halve output writeback
    if the consumer tolerates it.
    """
    B, L = x.shape
    H = w1.shape[1]
    O = w2.shape[1]
    out_dtype = x.dtype if out_dtype is None else out_dtype

    # Only cast if not already prepared (prefer prepare_params()).
    if w1.dtype != compute_dtype:
        w1 = w1.astype(compute_dtype)
    if w2.dtype != compute_dtype:
        w2 = w2.astype(compute_dtype)
    b1_2d = b1.astype(jnp.float32).reshape(1, H)
    b2_2d = b2.astype(jnp.float32).reshape(1, O)

    if batch_tile is None:
        batch_tile = _default_batch_tile(B)
    batch_tile = min(batch_tile, B)
    grid = (pl.cdiv(B, batch_tile),)   # ragged last block handled by Pallas

    w_itemsize = jnp.dtype(compute_dtype).itemsize
    flops = 2 * B * (L * H + H * O)
    bytes_accessed = (B * L * x.dtype.itemsize          # x (read once, in-kernel cast)
                      + L * H * w_itemsize              # w1
                      + H * O * w_itemsize              # w2
                      + (H + O) * 4                     # biases (f32)
                      + B * O * jnp.dtype(out_dtype).itemsize)  # out

    out = pl.pallas_call(
        _text_decoder_kernel,
        out_shape=jax.ShapeDtypeStruct((B, O), out_dtype),
        grid_spec=pl.GridSpec(
            grid=grid,
            in_specs=[
                pl.BlockSpec((batch_tile, L), lambda i: (i, 0)),   # x tile
                # Constant-index weights/biases: fetched once, resident across
                # grid steps (total ~160 KiB bf16 at these shapes).
                pl.BlockSpec((L, H), lambda i: (0, 0)),            # w1 (full)
                pl.BlockSpec((1, H), lambda i: (0, 0)),            # b1
                pl.BlockSpec((H, O), lambda i: (0, 0)),            # w2 (full)
                pl.BlockSpec((1, O), lambda i: (0, 0)),            # b2
            ],
            out_specs=pl.BlockSpec((batch_tile, O), lambda i: (i, 0)),
        ),
        compiler_params=pltpu.CompilerParams(
            dimension_semantics=("parallel",),
            # v5e's default scoped VMEM is 16 MiB; only raise it when the
            # per-step footprint (tiles + f32 hidden intermediate) grows.
            vmem_limit_bytes=(32 * 1024 * 1024 if batch_tile >= 1024 else None),
        ),
        cost_estimate=pl.CostEstimate(
            flops=flops, transcendentals=0, bytes_accessed=bytes_accessed),
    )(x, w1, b1_2d, w2, b2_2d)

    return out


def init_params(key, latent_dim, output_dim, hidden=512, dtype=jnp.float32):
    """Deterministic PyTorch-style (uniform +-1/sqrt(fan_in)) init.
    Weights are returned already transposed to (in, out)."""
    k1, k2, k3, k4 = jax.random.split(key, 4)
    bound1 = 1.0 / (latent_dim ** 0.5)
    bound2 = 1.0 / (hidden ** 0.5)
    w1 = jax.random.uniform(k1, (latent_dim, hidden), dtype, -bound1, bound1)
    b1 = jax.random.uniform(k2, (hidden,), dtype, -bound1, bound1)
    w2 = jax.random.uniform(k3, (hidden, output_dim), dtype, -bound2, bound2)
    b2 = jax.random.uniform(k4, (output_dim,), dtype, -bound2, bound2)
    return w1, b1, w2, b2


def _reference(x, w1, b1, w2, b2, compute_dtype, out_dtype):
    """Pure-JAX reference with the same mixed-precision recipe as the kernel
    (bf16 MXU operands, f32 accumulation, eval-mode dropout == identity)."""
    h = jnp.dot(x.astype(compute_dtype), w1.astype(compute_dtype),
                preferred_element_type=jnp.float32)
    h = jnp.maximum(h + b1.astype(jnp.float32).reshape(1, -1), 0.0)
    y = jnp.dot(h.astype(compute_dtype), w2.astype(compute_dtype),
                preferred_element_type=jnp.float32)
    return (y + b2.astype(jnp.float32).reshape(1, -1)).astype(out_dtype)


if __name__ == "__main__":
    latent_dim = 32
    output_dim = 128

    key = jax.random.PRNGKey(0)
    k_x, k_p, k_x2 = jax.random.split(key, 3)
    w1, b1, w2, b2 = init_params(k_p, latent_dim, output_dim)
    # One-off param preparation (weights in bf16, biases as f32 rows).
    pw1, pb1, pw2, pb2 = prepare_params(w1, b1, w2, b2)

    # Case 1: small batch -> single grid step (block == full array dims).
    batch = 16
    x = jax.random.normal(k_x, (batch, latent_dim), jnp.float32)
    out = jax.block_until_ready(text_decoder_forward(x, pw1, pb1, pw2, pb2))
    ref = _reference(x, w1, b1, w2, b2, jnp.bfloat16, x.dtype)
    assert out.shape == (batch, output_dim)
    assert out.dtype == x.dtype
    assert jnp.allclose(out, ref, atol=1e-2, rtol=1e-2)

    # Case 2: multi-step grid with a ragged last batch block (no explicit pad).
    batch2 = 300
    x2 = jax.random.normal(k_x2, (batch2, latent_dim), jnp.float32)
    out2 = jax.block_until_ready(
        text_decoder_forward(x2, pw1, pb1, pw2, pb2, batch_tile=128))
    ref2 = _reference(x2, w1, b1, w2, b2, jnp.bfloat16, x2.dtype)
    assert out2.shape == (batch2, output_dim)
    assert jnp.allclose(out2, ref2, atol=1e-2, rtol=1e-2)

    print("KERNEL_OK")
</pallas_src>

<mosaic_0001>
module attributes {stable_mosaic.version = 11 : i64} {
  func.func @_text_decoder_kernel(%arg0: i32, %arg1: memref<16x32xf32, #tpu.memory_space<vmem>>, %arg2: memref<32x512xbf16, #tpu.memory_space<vmem>>, %arg3: memref<1x512xf32, #tpu.memory_space<vmem>>, %arg4: memref<512x128xbf16, #tpu.memory_space<vmem>>, %arg5: memref<1x128xf32, #tpu.memory_space<vmem>>, %arg6: memref<16x128xf32, #tpu.memory_space<vmem>>) attributes {dimension_semantics = [#tpu.dimension_semantics<parallel>], iteration_bounds = array<i64: 1>, scalar_prefetch = 0 : i64, scratch_operands = 0 : i64, tpu.core_type = #tpu.core_type<tc>, window_params = [{transform_indices = @transform_0, window_bounds = array<i64: 16, 32>}, {pipeline_mode = #tpu.pipeline_mode<synchronous>, transform_indices = @transform_1, window_bounds = array<i64: 32, 512>}, {pipeline_mode = #tpu.pipeline_mode<synchronous>, transform_indices = @transform_2, window_bounds = array<i64: 1, 512>}, {pipeline_mode = #tpu.pipeline_mode<synchronous>, transform_indices = @transform_3, window_bounds = array<i64: 512, 128>}, {pipeline_mode = #tpu.pipeline_mode<synchronous>, transform_indices = @transform_4, window_bounds = array<i64: 1, 128>}, {transform_indices = @transform_5, window_bounds = array<i64: 16, 128>}]} {
    %c0 = arith.constant 0 : index
    %c0_0 = arith.constant 0 : index
    %0 = vector.load %arg1[%c0, %c0_0] : memref<16x32xf32, #tpu.memory_space<vmem>>, vector<16x32xf32>
    %1 = arith.truncf %0 : vector<16x32xf32> to vector<16x32xbf16>
    %c0_1 = arith.constant 0 : index
    %c0_2 = arith.constant 0 : index
    %2 = vector.load %arg2[%c0_1, %c0_2] : memref<32x512xbf16, #tpu.memory_space<vmem>>, vector<32x512xbf16>
    %cst = arith.constant dense<0.000000e+00> : vector<16x512xf32>
    %3 = tpu.matmul %1, %2, %cst {dimension_numbers = #tpu.dot_dimension_numbers<[1], [0], [0], [1], [0, 0, 1, 1], [], []>} : vector<16x32xbf16>, vector<32x512xbf16>, vector<16x512xf32> -> vector<16x512xf32>
    %c0_3 = arith.constant 0 : index
    %c0_4 = arith.constant 0 : index
    %4 = vector.load %arg3[%c0_3, %c0_4] : memref<1x512xf32, #tpu.memory_space<vmem>>, vector<1x512xf32>
    %5 = vector.broadcast %4 : vector<1x512xf32> to vector<16x512xf32>
    %6 = arith.addf %3, %5 : vector<16x512xf32>
    %cst_5 = arith.constant 0.000000e+00 : f32
    %7 = vector.broadcast %cst_5 : f32 to vector<16x512xf32>
    %8 = arith.maximumf %6, %7 : vector<16x512xf32>
    %9 = arith.truncf %8 : vector<16x512xf32> to vector<16x512xbf16>
    %c0_6 = arith.constant 0 : index
    %c0_7 = arith.constant 0 : index
    %10 = vector.load %arg4[%c0_6, %c0_7] : memref<512x128xbf16, #tpu.memory_space<vmem>>, vector<512x128xbf16>
    %cst_8 = arith.constant dense<0.000000e+00> : vector<16x128xf32>
    %11 = tpu.matmul %9, %10, %cst_8 {dimension_numbers = #tpu.dot_dimension_numbers<[1], [0], [0], [1], [0, 0, 1, 1], [], []>} : vector<16x512xbf16>, vector<512x128xbf16>, vector<16x128xf32> -> vector<16x128xf32>
    %c0_9 = arith.constant 0 : index
    %c0_10 = arith.constant 0 : index
    %12 = vector.load %arg5[%c0_9, %c0_10] : memref<1x128xf32, #tpu.memory_space<vmem>>, vector<1x128xf32>
    %13 = vector.broadcast %12 : vector<1x128xf32> to vector<16x128xf32>
    %14 = arith.addf %11, %13 : vector<16x128xf32>
    %c0_11 = arith.constant 0 : index
    %c0_12 = arith.constant 0 : index
    %15 = vector.load %arg6[%c0_11, %c0_12] : memref<16x128xf32, #tpu.memory_space<vmem>>, vector<16x128xf32>
    tpu.vector_store %arg6[%c0_11, %c0_12], %14 {strides = array<i32>} : memref<16x128xf32, #tpu.memory_space<vmem>>, vector<16x128xf32>,
    return
  }
  func.func @transform_0(%arg0: i32) -> (i32, i32) {
    %c0_i32 = arith.constant 0 : i32
    %c0_i32_0 = arith.constant 0 : i32
    return %arg0, %c0_i32 : i32, i32
  }
  func.func @transform_1(%arg0: i32) -> (i32, i32) {
    %c0_i32 = arith.constant 0 : i32
    %c0_i32_0 = arith.constant 0 : i32
    %c0_i32_1 = arith.constant 0 : i32
    return %c0_i32, %c0_i32_0 : i32, i32
  }
  func.func @transform_2(%arg0: i32) -> (i32, i32) {
    %c0_i32 = arith.constant 0 : i32
    %c0_i32_0 = arith.constant 0 : i32
    %c0_i32_1 = arith.constant 0 : i32
    return %c0_i32, %c0_i32_0 : i32, i32
  }
  func.func @transform_3(%arg0: i32) -> (i32, i32) {
    %c0_i32 = arith.constant 0 : i32
    %c0_i32_0 = arith.constant 0 : i32
    %c0_i32_1 = arith.constant 0 : i32
    return %c0_i32, %c0_i32_0 : i32, i32
  }
  func.func @transform_4(%arg0: i32) -> (i32, i32) {
    %c0_i32 = arith.constant 0 : i32
    %c0_i32_0 = arith.constant 0 : i32
    %c0_i32_1 = arith.constant 0 : i32
    return %c0_i32, %c0_i32_0 : i32, i32
  }
  func.func @transform_5(%arg0: i32) -> (i32, i32) {
    %c0_i32 = arith.constant 0 : i32
    %c0_i32_0 = arith.constant 0 : i32
    return %arg0, %c0_i32 : i32, i32
  }
}

</mosaic_0001>

<bundles_post_ra>
// kernel: tpu_custom_call.1
= control target key start
LH: loop header
LB: loop body
LE: loop exit
PB: predicated region body
PF: predicated region fallthrough
CT: control target
= control target key end

     0   :  { %10 = vsyncpa [#allocation3], 0  ;;  %s964_s0 = inlined_call_operand.hbm [shape: f32[16,32], index: 0, kind: input, shape index: {}]   ;;  %s965_s1 = inlined_call_operand.hbm [shape: bf16[32,512], index: 1, kind: input, shape index: {}]   ;;  %s966_s2 = inlined_call_operand.hbm [shape: f32[1,512], index: 2, kind: input, shape index: {}]   ;;  %s967_s3 = inlined_call_operand.hbm [shape: bf16[512,128], index: 3, kind: input, shape index: {}]   ;;  %s968_s4 = inlined_call_operand.vmem [shape: f32[1,128], index: 4, kind: input, shape index: {}]   ;;  %s969_s5 = inlined_call_operand.hbm [shape: f32[16,128], index: 5, kind: output, shape index: {}]  }
   0x1   :  { %11 = vsyncpa [#allocation6], 0 }
   0x2   :  { %12 = vsyncpa [#allocation9], 0  ;;  %s31_s20 = sshll.u32 %s965_s1, 4  ;;  %s32_s20 = int_to_ptr.hbm [resolvable:$true] %s31_s20 }
   0x3   :  { %13 = vsyncpa [#allocation4], 0  ;;  %s899_s21 = smov [#allocation5]   ;;  %s18_s25 = sshll.u32 %s964_s0, 4  ;;  %s19_s25 = int_to_ptr.hbm [resolvable:$true] %s18_s25 }
   0x4   :  { %s33_s22 = sshll.u32 %s899_s21, 4  ;;  %s900_s26 = smov 256   ;;  %s34_s22 = int_to_ptr.vmem [resolvable:$true] %s33_s22 }
   0x5   :  { %s901_s27 = smov 16   ;;  %s902_s28 = smov [#allocation2]  }
   0x6   :  { %39 = dma.hbm_to_vmem [thread:$0]  %s32_s20, 1024, %s34_s22, [#allocation6], %s900_s26, %s900_s26, %s901_s27  }
   0x7   :  { %s20_s29 = sshll.u32 %s902_s28, 4  ;;  %s903_s30 = smov 128   ;;  %s21_s29 = int_to_ptr.vmem [resolvable:$true] %s20_s29 }
   0x8   :  { %s904_s6 = smov 8   ;;  %s45_s8 = sshll.u32 %s966_s2, 4  ;;  %s46_s8 = int_to_ptr.hbm [resolvable:$true] %s45_s8 }
   0x9   :  { %26 = dma.hbm_to_vmem [thread:$0]  %s19_s25, 256, %s21_s29, [#allocation3], %s903_s30, %s903_s30, %s904_s6  }
   0xa   :  { %s905_s9 = smov [#allocation7]   ;;  %s55_s12 = sshll.u32 %s967_s3, 4  ;;  %s56_s12 = int_to_ptr.hbm [resolvable:$true] %s55_s12 }
   0xb   :  { %s47_s0 = sshll.u32 %s905_s9, 4  ;;  %s906_s13 = smov [#allocation8]   ;;  %s48_s0 = int_to_ptr.vmem [resolvable:$true] %s47_s0 }
   0xc   :  { %50 = dma.hbm_to_vmem [thread:$0]  %s46_s8, 64, %s48_s0, [#allocation6]  }
   0xd   :  { %s57_s14 = sshll.u32 %s906_s13, 4  ;;  %s907_s15 = smov 64   ;;  %s58_s14 = int_to_ptr.vmem [resolvable:$true] %s57_s14 }
   0xe   :  { %s908_s16 = smov 4  }
   0xf   :  { %63 = dma.hbm_to_vmem [thread:$0]  %s56_s12, 4096, %s58_s14, [#allocation9], %s907_s15, %s907_s15, %s908_s16  }
  0x10   :  { %891 = dma.done.wait [#allocation3], 256  }
  0x11   :  { %892 = vsyncadd [#allocation3], 4294967040 }
  0x12   :  { %893 = dma.done.wait [#allocation6], 1088  }
  0x13   :  { %894 = vsyncadd [#allocation6], 4294966208 }
  0x14   :  { %895 = dma.done.wait [#allocation9], 4096  }
  0x15   :  { %896 = vsyncadd [#allocation9], 4294963200  ;;  %v573_v0 = vld [vmem:[#allocation5 + $0x20] sm:$0xf]  ;;  %v725_v1 = vld [vmem:[#allocation5 + $0x2c] sm:$0xf0] }
  0x16   :  { %v723_v2 = vld [vmem:[#allocation5 + $0x24] sm:$0xf]  ;;  %v574_v3 = vor.u32 %v725_v1, %v573_v0  ;;  %v575_v4 = vld [vmem:[#allocation5 + $0x30] sm:$0xf0]  ;;  %v581_v5 = vld [vmem:[#allocation5 + $0x28] sm:$0xf] }
  0x17   :  { %v726_v6 = vld [vmem:[#allocation5 + $0x34] sm:$0xf0]  ;;  %v578_v7 = vor.u32 %v723_v2, %v575_v4  ;;  %v724_v9 = vld [vmem:[#allocation5 + $0x2c] sm:$0xf]  ;;  %v583_v10 = vld [vmem:[#allocation5 + $0x38] sm:$0xf0] }
  0x18   :  { %v582_v8 = vor.u32 %v726_v6, %v581_v5  ;;  %v557_v11 = vld [vmem:[#allocation5] sm:$0xf]  ;;  %154 = vmatpush.bf16.msra.mxu0 %v574_v3  ;;  %v586_v12 = vor.u32 %v724_v9, %v583_v10  ;;  %v721_v13 = vld [vmem:[#allocation5 + $0xc] sm:$0xf0]  ;;  %v719_v14 = vld [vmem:[#allocation5 + $0x4] sm:$0xf] }
  0x19   :  { %v559_v15 = vld [vmem:[#allocation5 + $0x10] sm:$0xf0]  ;;  %168 = vmatpush.bf16.msra.mxu1 %v578_v7  ;;  %v558_v16 = vor.u32 %v721_v13, %v557_v11  ;;  %v565_v18 = vld [vmem:[#allocation5 + $0x8] sm:$0xf]  ;;  %v722_v19 = vld [vmem:[#allocation5 + $0x14] sm:$0xf0] }
  0x1a   :  { %182 = vmatpush.bf16.msra.mxu2 %v582_v8  ;;  %v562_v17 = vor.u32 %v719_v14, %v559_v15  ;;  %v720_v20 = vld [vmem:[#allocation5 + $0xc] sm:$0xf]  ;;  %196 = vmatpush.bf16.msra.mxu3 %v586_v12  ;;  %v566_v21 = vor.u32 %v722_v19, %v565_v18  ;;  %v567_v22 = vld [vmem:[#allocation5 + $0x18] sm:$0xf0]  ;;  %v83_v23 = vld [vmem:[#allocation2] sm:$0xff]  ;;  %vm144_vm0 = vcmask 261120  }
  0x1b   :  { %v84_v24 = vld [vmem:[#allocation2 + $0x8] sm:$0xff]  ;;  %v570_v25 = vor.u32 %v720_v20, %v567_v22  ;;  %v732_v34 = vld [vmem:[#allocation8 + $0x28] sm:$0xff]  ;;  %v731_v38 = vld [vmem:[#allocation8 + $0x20] sm:$0xff]  ;;  %s909_s17 = smov [#allocation10]   ;;  %s540_s21 = sshll.u32 %s969_s5, 4  ;;  %s541_s21 = int_to_ptr.hbm [resolvable:$true] %s540_s21 }
  0x1c   :  { %v85_v26 = vpack.c.bf16 %v84_v24, %v83_v23  ;;  %v734_v27 = vld [vmem:[#allocation8 + $0x38] sm:$0xff]  ;;  %155 = vmatpush.bf16.msra.mxu0 %v558_v16  ;;  %v733_v30 = vld [vmem:[#allocation8 + $0x30] sm:$0xff]  ;;  %v740_v36 = vld [vmem:[#allocation8 + $0x68] sm:$0xff]  ;;  %s538_s18 = sshll.u32 %s909_s17, 4  ;;  %s539_s18 = int_to_ptr.vmem [resolvable:$true] %s538_s18 }
  0x1d   :  { %v742_v28 = vld [vmem:[#allocation8 + $0x78] sm:$0xff]  ;;  %169 = vmatpush.bf16.msra.mxu1 %v562_v17  ;;  %v741_v32 = vld [vmem:[#allocation8 + $0x70] sm:$0xff]  ;;  %v748_v37 = vld [vmem:[#allocation8 + $0xa8] sm:$0xff] }
  0x1e   :  { %183 = vmatpush.bf16.msra.mxu2 %v566_v21  ;;  %v750_v29 = vld [vmem:[#allocation8 + $0xb8] sm:$0xff]  ;;  %197 = vmatpush.bf16.msra.mxu3 %v570_v25  ;;  %v749_v33 = vld [vmem:[#allocation8 + $0xb0] sm:$0xff]  ;;  %v756_v39 = vld [vmem:[#allocation8 + $0xe8] sm:$0xff] }
  0x1f   :  { %v758_v31 = vld [vmem:[#allocation8 + $0xf8] sm:$0xff]  ;;  %587 = vmatmul.msk.bf16.vlgmr.msra.gmra.mxu0 %vm144_vm0, %v85_v26  ;;  %v757_v35 = vld [vmem:[#allocation8 + $0xf0] sm:$0xff]  ;;  %v739_v40 = vld [vmem:[#allocation8 + $0x60] sm:$0xff] }
  0x20   :  { %476 = vmatpush.bf16.msrb.mxu0 %v734_v27  ;;  %588 = vmatmul.msk.bf16.vlgmr.msra.gmra.mxu1 %vm144_vm0, %v85_v26  ;;  %v730_v41 = vld [vmem:[#allocation8 + $0x18] sm:$0xff]  ;;  %v747_v43 = vld [vmem:[#allocation8 + $0xa0] sm:$0xff]  ;;  %v729_v45 = vld [vmem:[#allocation8 + $0x10] sm:$0xff] }
  0x21   :  { %490 = vmatpush.bf16.msrb.mxu1 %v742_v28  ;;  %589 = vmatmul.msk.bf16.vlgmr.msra.gmra.mxu2 %vm144_vm0, %v85_v26  ;;  %v738_v42 = vld [vmem:[#allocation8 + $0x58] sm:$0xff]  ;;  %v755_v44 = vld [vmem:[#allocation8 + $0xe0] sm:$0xff]  ;;  %v737_v46 = vld [vmem:[#allocation8 + $0x50] sm:$0xff] }
  0x22   :  { %590 = vmatmul.msk.bf16.vlgmr.msra.gmra.mxu3 %vm144_vm0, %v85_v26  ;;  %504 = vmatpush.bf16.msrb.mxu2 %v750_v29  ;;  %v746_v47 = vld [vmem:[#allocation8 + $0x98] sm:$0xff]  ;;  %v728_v49 = vld [vmem:[#allocation8 + $0x8] sm:$0xff]  ;;  %v745_v51 = vld [vmem:[#allocation8 + $0x90] sm:$0xff] }
  0x23   :  { %518 = vmatpush.bf16.msrb.mxu3 %v758_v31  ;;  %v754_v48 = vld [vmem:[#allocation8 + $0xd8] sm:$0xff]  ;;  %v736_v50 = vld [vmem:[#allocation8 + $0x48] sm:$0xff]  ;;  %v753_v52 = vld [vmem:[#allocation8 + $0xd0] sm:$0xff] }
  0x24   :  { %477 = vmatpush.bf16.msrb.mxu0 %v733_v30  ;;  %v727_v53 = vld [vmem:[#allocation8] sm:$0xff]  ;;  %v744_v55 = vld [vmem:[#allocation8 + $0x88] sm:$0xff]  ;;  %v94_v59 = vld [vmem:[#allocation7] sm:$0xf] }
  0x25   :  { %491 = vmatpush.bf16.msrb.mxu1 %v741_v32  ;;  %v735_v54 = vld [vmem:[#allocation8 + $0x40] sm:$0xff]  ;;  %v752_v56 = vld [vmem:[#allocation8 + $0xc8] sm:$0xff]  ;;  %v96_v61 = vperm.slane %v94_v59, 0  ;;  %v97_v63 = vperm.slane %v94_v59, 1  ;;  %v98_v9 = vperm.slane %v94_v59, 2  ;;  %v99_v11 = vperm.slane %v94_v59, 3 }
  0x26   :  { %505 = vmatpush.bf16.msrb.mxu2 %v749_v33  ;;  %v743_v57 = vld [vmem:[#allocation8 + $0x80] sm:$0xff]  ;;  %v770_v29 = vld [vmem:[%s968_s4] ss:$0 sm:$0xff] }
  0x27   :  { %519 = vmatpush.bf16.msrb.mxu3 %v757_v35  ;;  %v751_v58 = vld [vmem:[#allocation8 + $0xc0] sm:$0xff] }
  0x28   :  { %478 = vmatpush.bf16.msrb.mxu0 %v732_v34 }
  0x29   :  { %492 = vmatpush.bf16.msrb.mxu1 %v740_v36 }
  0x2a   :  { %506 = vmatpush.bf16.msrb.mxu2 %v748_v37 }
  0x2b   :  { %520 = vmatpush.bf16.msrb.mxu3 %v756_v39 }
  0x2c   :  { %479 = vmatpush.bf16.msrb.mxu0 %v731_v38 }
  0x2d   :  { %493 = vmatpush.bf16.msrb.mxu1 %v739_v40 }
  0x2e   :  { %507 = vmatpush.bf16.msrb.mxu2 %v747_v43 }
  0x2f   :  { %521 = vmatpush.bf16.msrb.mxu3 %v755_v44 }
  0x30   :  { %480 = vmatpush.bf16.msrb.mxu0 %v730_v41 }
  0x31   :  { %494 = vmatpush.bf16.msrb.mxu1 %v738_v42 }
  0x32   :  { %508 = vmatpush.bf16.msrb.mxu2 %v746_v47 }
  0x33   :  { %522 = vmatpush.bf16.msrb.mxu3 %v754_v48 }
  0x34   :  { %481 = vmatpush.bf16.msrb.mxu0 %v729_v45 }
  0x35   :  { %495 = vmatpush.bf16.msrb.mxu1 %v737_v46 }
  0x36   :  { %509 = vmatpush.bf16.msrb.mxu2 %v745_v51 }
  0x37   :  { %523 = vmatpush.bf16.msrb.mxu3 %v753_v52 }
  0x38   :  { %482 = vmatpush.bf16.msrb.mxu0 %v728_v49 }
  0x39   :  { %496 = vmatpush.bf16.msrb.mxu1 %v736_v50 }
  0x3a   :  { %510 = vmatpush.bf16.msrb.mxu2 %v744_v55 }
  0x3b   :  { %524 = vmatpush.bf16.msrb.mxu3 %v752_v56 }
  0x3c   :  { %483 = vmatpush.bf16.msrb.mxu0 %v727_v53 }
  0x3d   :  { %497 = vmatpush.bf16.msrb.mxu1 %v735_v54 }
  0x3e   :  { %511 = vmatpush.bf16.msrb.mxu2 %v743_v57 }
  0x3f   :  { %525 = vmatpush.bf16.msrb.mxu3 %v751_v58 }
  0x9c   :  { %v157_v60 = vpop.f32.mrf.mxu0 }
  0x9d   :  { %v171_v62 = vpop.f32.mrf.mxu1  ;;  %v158_v0 = vadd.f32 %v157_v60, %v96_v61 }
  0x9e   :  { %v172_v1 = vadd.f32 %v171_v62, %v97_v63 }
  0x9f   :  { %v204_v5 = vmax.f32 %v158_v0, 0.0 }
  0xa0   :  { %v205_v8 = vmax.f32 %v172_v1, 0.0 }
  0xa4   :  { %v185_v2 = vpop.f32.mrf.mxu2  ;;  %v159_v4 = vpop.f32.mrf.mxu0 }
  0xa5   :  { %v199_v3 = vpop.f32.mrf.mxu3  ;;  %v160_v6 = vadd.f32 %v159_v4, %v96_v61  ;;  %v173_v7 = vpop.f32.mrf.mxu1  ;;  %v186_v15 = vadd.f32 %v185_v2, %v98_v9 }
  0xa6   :  { %v174_v10 = vadd.f32 %v173_v7, %v97_v63  ;;  %v200_v17 = vadd.f32 %v199_v3, %v99_v11 }
  0xa7   :  { %v208_v12 = vmax.f32 %v160_v6, 0.0  ;;  %v206_v22 = vmax.f32 %v186_v15, 0.0 }
  0xa8   :  { %v209_v13 = vmax.f32 %v174_v10, 0.0  ;;  %v207_v24 = vmax.f32 %v200_v17, 0.0 }
  0xa9   :  { %v212_v14 = vpack.c.bf16 %v208_v12, %v204_v5 }
  0xaa   :  { %v213_v16 = vpack.c.bf16 %v209_v13, %v205_v8 }
  0xab   :  { %484 = vmatmul.bf16.vlgmr.msrb.gmra.mxu0 %v212_v14 }
  0xac   :  { %v187_v18 = vpop.f32.mrf.mxu2  ;;  %498 = vmatmul.bf16.vlgmr.msrb.gmra.mxu1 %v213_v16 }
  0xad   :  { %v188_v19 = vadd.f32 %v187_v18, %v98_v9  ;;  %v201_v20 = vpop.f32.mrf.mxu3 }
  0xae   :  { %v202_v21 = vadd.f32 %v201_v20, %v99_v11 }
  0xaf   :  { %v210_v23 = vmax.f32 %v188_v19, 0.0 }
  0xb0   :  { %v211_v25 = vmax.f32 %v202_v21, 0.0 }
  0xb1   :  { %v214_v26 = vpack.c.bf16 %v210_v23, %v206_v22 }
  0xb2   :  { %v215_v27 = vpack.c.bf16 %v211_v25, %v207_v24 }
  0xb3   :  { %512 = vmatmul.bf16.vlgmr.msrb.gmra.mxu2 %v214_v26 }
  0xb4   :  { %526 = vmatmul.bf16.vlgmr.msrb.gmra.mxu3 %v215_v27 }
 0x128   :  { %v485_v28 = vpop.f32.mrf.mxu0 }
 0x129   :  { %v486_v30 = vadd.f32 %v770_v29, %v485_v28  ;;  %v499_v31 = vpop.f32.mrf.mxu1 }
 0x12b   :  { %v500_v32 = vadd.f32 %v499_v31, %v486_v30 }
 0x130   :  { %v487_v33 = vpop.f32.mrf.mxu0 }
 0x131   :  { %v488_v37 = vadd.f32 %v770_v29, %v487_v33  ;;  %v501_v39 = vpop.f32.mrf.mxu1 }
 0x133   :  { %v502_v40 = vadd.f32 %v501_v39, %v488_v37 }
 0x136   :  { %v513_v34 = vpop.f32.mrf.mxu2 }
 0x137   :  { %v514_v35 = vadd.f32 %v513_v34, %v500_v32  ;;  %v527_v36 = vpop.f32.mrf.mxu3 }
 0x139   :  { %v528_v38 = vadd.f32 %v527_v36, %v514_v35 }
 0x13b   :  { %532 = vst [vmem:[#allocation10] sm:$0xff] %v528_v38 }
 0x13e   :  { %v515_v41 = vpop.f32.mrf.mxu2 }
 0x13f   :  { %v516_v42 = vadd.f32 %v515_v41, %v502_v40  ;;  %v529_v43 = vpop.f32.mrf.mxu3 }
 0x141   :  { %v530_v44 = vadd.f32 %v529_v43, %v516_v42 }
 0x143   :  { %533 = vst [vmem:[#allocation10 + $0x8] sm:$0xff] %v530_v44 }
 0x144   :  { %546 = dma.vmem_to_hbm [thread:$0]  %s539_s18, 256, %s541_s21, [#allocation4], %s903_s30, %s903_s30, %s904_s6  }
 0x145   :  { %897 = dma.done.wait [#allocation4], 256  }
 0x146   :  { %898 = vsyncadd [#allocation4], 4294967040 }
 0x147   :  { %551 = vsyncpa [#allocation3], 1 }
 0x148   :  { %552 = vsyncpa [#allocation6], 1 }
 0x149   :  { %553 = vsyncpa [#allocation9], 1 }
 0x14a   :  { %554 = vsyncpa [#allocation4], 1 }

</bundles_post_ra>
